<compile_context>
chip_gen: v7x
topology: tpu7x:2x2x1
jax: 0.10.0
libtpu: 0.0.40
codegen_flags: <defaults>
</compile_context>

<pallas_src>
import functools
import math

import jax
import jax.numpy as jnp
from jax import lax
from jax.experimental import pallas as pl
from jax.experimental.pallas import tpu as pltpu


# ----------------------------- helpers ---------------------------------------

def _round_up(n, m):
    return (n + m - 1) // m * m


def _gelu_exact(x):
    return 0.5 * x * (1.0 + lax.erf(x * (1.0 / math.sqrt(2.0))))


def _vmem_limit_bytes():
    """~80% of per-core VMEM if queryable; conservative fallback fits v7x."""
    try:
        cap = int(pltpu.get_tpu_info().vmem_capacity_bytes)
    except Exception:
        return 48 * 1024 * 1024
    return max(32 * 1024 * 1024, min(int(cap * 0.8), 110 * 1024 * 1024))


# ----------------------------- kernel ----------------------------------------

def fullmodel_kernel(
    e_real, v_real,                       # static python ints (via partial)
    x_ref, z_ref, t_ref,                  # per-batch-tile activations / targets
    w1_ref, b1_ref,                       # lm_in1
    w2_ref, b2_ref,                       # lm_in2
    wpex_ref, wpez_ref, bpe_ref,          # wpe, split over the concat axis
    lng_ref, lnb_ref,                     # block.ln gamma/beta (zero-padded)
    wfc_ref, bfc_ref,                     # block.mlp.c_fc
    wpr_ref, bpr_ref,                     # block.mlp.c_proj
    whead_ref,                            # lm_head V tile (e_p, TV)
    logits_ref, nll_ref,                  # outputs: (TB, TV) bf16 ; (8, 128) f32
    u_sc, m_sc, l_sc, tgt_sc,             # VMEM scratch (persist across V tiles)
):
    f32 = jnp.float32
    bf16 = jnp.bfloat16
    j = pl.program_id(1)

    # ---- hidden state: compute once per batch tile (first vocab step) -------
    @pl.when(j == 0)
    def _compute_hidden():
        x = x_ref[...]                    # (TB, Dxp) bf16
        z = z_ref[...]                    # (TB, Dzp) bf16

        h1 = jnp.dot(x, w1_ref[...], preferred_element_type=f32) + b1_ref[...]
        h2 = jnp.dot(z, w2_ref[...], preferred_element_type=f32) + b2_ref[...]

        # wpe(concat(h1, h2, 1)) == h1 @ Wpe_x + h2 @ Wpe_z + b_pe (no concat).
        u = (jnp.dot(h1.astype(bf16), wpex_ref[...], preferred_element_type=f32)
             + jnp.dot(h2.astype(bf16), wpez_ref[...], preferred_element_type=f32)
             + bpe_ref[...])

        # LayerNorm over the real E columns.  Padded columns of u are exactly
        # zero (zero-padded weights/biases), so padded-width sums equal
        # real-width sums; only the centered term needs masking.  gamma/beta
        # are zero on pad columns so ln is exactly zero there too.
        ep = u.shape[-1]
        e_cols = lax.broadcasted_iota(jnp.int32, (1, ep), 1)
        e_mask = e_cols < e_real
        inv_e = 1.0 / float(e_real)
        mu = jnp.sum(u, axis=-1, keepdims=True) * inv_e
        xc = jnp.where(e_mask, u - mu, 0.0)
        var = jnp.sum(xc * xc, axis=-1, keepdims=True) * inv_e
        ln = xc * lax.rsqrt(var + 1e-5) * lng_ref[...] + lnb_ref[...]

        # MLP (dropout p = 0 -> identity) and residual.  f32 elementwise math
        # (v5e has no bf16 VPU/EUP path anyway).
        h = jnp.dot(ln.astype(bf16), wfc_ref[...], preferred_element_type=f32) + bfc_ref[...]
        h = _gelu_exact(h)
        h = jnp.dot(h.astype(bf16), wpr_ref[...], preferred_element_type=f32) + bpr_ref[...]
        u_sc[...] = u + h

        # online-LSE state
        m_sc[...] = jnp.full(m_sc.shape, -jnp.inf, dtype=f32)
        l_sc[...] = jnp.zeros(l_sc.shape, f32)
        tgt_sc[...] = jnp.zeros(tgt_sc.shape, f32)

    # ---- lm_head for this vocab tile + online LSE ----------------------------
    logits = jnp.dot(u_sc[...].astype(bf16), whead_ref[...],
                     preferred_element_type=f32)          # (TB, TV) f32
    logits_ref[...] = logits.astype(logits_ref.dtype)     # bf16 store (lane-dense)

    tb, tv = logits.shape
    v_cols = j * tv + lax.broadcasted_iota(jnp.int32, (tb, tv), 1)
    lm = jnp.where(v_cols < v_real, logits, jnp.float32(-1e30))
    tile_max = jnp.max(lm, axis=-1, keepdims=True)
    m_new = jnp.maximum(m_sc[...], tile_max)
    l_sc[...] = (l_sc[...] * jnp.exp(m_sc[...] - m_new)
                 + jnp.sum(jnp.exp(lm - m_new), axis=-1, keepdims=True))
    m_sc[...] = m_new

    # Target logit: only the tile containing the target column contributes.
    # (Out-of-range targets >= n_vocab but != -1 silently give tgt=0, as before.)
    t = t_ref[...]                                        # (TB, 1) int32
    tgt_sc[...] = tgt_sc[...] + jnp.sum(
        jnp.where(v_cols == t, logits, 0.0), axis=-1, keepdims=True)

    # ---- finalize NLL on the last vocab tile ---------------------------------
    @pl.when(j == pl.num_programs(1) - 1)
    def _finalize():
        lse = m_sc[...] + jnp.log(l_sc[...])
        valid = (t_ref[...] != -1).astype(f32)
        nll = (lse - tgt_sc[...]) * valid                 # (TB, 1), masked rows = 0
        part = jnp.sum(nll, axis=0, keepdims=True)        # (1, 1) per-tile sum
        nll_ref[...] = jnp.broadcast_to(part, nll_ref.shape)  # dense 8x128 store


# ----------------------------- wrapper ----------------------------------------

def make_fullmodel_fn(params, *, block_b=256, block_v=512):
    """Pads & casts parameters once, returns a jitted forward:
       (x, z, targets) -> (logits_bf16, loss, loss)."""
    assert block_b % 8 == 0, "batch tile must be a multiple of the sublane (8)"
    assert block_v % 128 == 0, "vocab tile must be a multiple of the lane (128)"

    d_x, n_embd = params["w1"].shape
    d_z = params["w2"].shape[0]
    n_hidden = params["wfc"].shape[1]
    n_vocab = params["whead"].shape[1]

    d_xp = _round_up(d_x, 128)
    d_zp = _round_up(d_z, 128)
    e_p = _round_up(n_embd, 128)
    h_p = _round_up(n_hidden, 128)
    block_v = min(block_v, _round_up(n_vocab, 128))
    v_p = _round_up(n_vocab, block_v)
    nv = v_p // block_v

    bf16 = jnp.bfloat16
    f32 = jnp.float32

    def pad2(a, rows, cols, dtype):
        out = jnp.zeros((rows, cols), f32)
        out = out.at[: a.shape[0], : a.shape[1]].set(a.astype(f32))
        return out.astype(dtype)

    # One-time host-side padding / dtype casts (bf16 weights halve VMEM).
    w1 = pad2(params["w1"], d_xp, e_p, bf16)
    b1 = pad2(params["b1"], 1, e_p, f32)
    w2 = pad2(params["w2"], d_zp, e_p, bf16)
    b2 = pad2(params["b2"], 1, e_p, f32)
    wpex = pad2(params["wpe_x"], e_p, e_p, bf16)
    wpez = pad2(params["wpe_z"], e_p, e_p, bf16)
    bpe = pad2(params["bpe"], 1, e_p, f32)
    lng = pad2(params["ln_g"], 1, e_p, f32)      # pad gamma/beta with zeros
    lnb = pad2(params["ln_b"], 1, e_p, f32)
    wfc = pad2(params["wfc"], e_p, h_p, bf16)
    bfc = pad2(params["bfc"], 1, h_p, f32)
    wpr = pad2(params["wpr"], h_p, e_p, bf16)
    bpr = pad2(params["bpr"], 1, e_p, f32)
    whead = pad2(params["whead"], e_p, v_p, bf16)

    kernel = functools.partial(fullmodel_kernel, n_embd, n_vocab)
    vmem_budget = _vmem_limit_bytes()

    def fwd(x, z, targets):
        b = x.shape[0]
        # Even number of batch tiles keeps both v7x TensorCores busy
        # ("parallel" axis is sharded over cores); neutral on v5e/v6e.
        nb = _round_up(pl.cdiv(b, block_b), 2)
        b_p = nb * block_b

        def pad_act(a, cols):
            out = jnp.zeros((b_p, cols), f32)
            out = out.at[:b, : a.shape[1]].set(a.astype(f32))
            return out.astype(bf16)

        xp = pad_act(x, d_xp)
        zp = pad_act(z, d_zp)
        tp = jnp.full((b_p, 1), -1, jnp.int32).at[:b, 0].set(targets.astype(jnp.int32))

        grid = (nb, nv)

        act = lambda cols: pl.BlockSpec((block_b, cols), lambda i, j: (i, 0))
        # Constant-index weights: single-buffered (resident, no re-DMA).
        res = lambda shape: pl.BlockSpec(shape, lambda i, j: (0, 0),
                                         pipeline_mode=pl.Buffered(1))

        in_specs = [
            act(d_xp), act(d_zp), act(1),
            res((d_xp, e_p)), res((1, e_p)),
            res((d_zp, e_p)), res((1, e_p)),
            res((e_p, e_p)), res((e_p, e_p)), res((1, e_p)),
            res((1, e_p)), res((1, e_p)),
            res((e_p, h_p)), res((1, h_p)),
            res((h_p, e_p)), res((1, e_p)),
            # V-tiled lm_head weight: default double-buffering prefetches tile j+1.
            pl.BlockSpec((e_p, block_v), lambda i, j: (0, j)),
        ]
        out_specs = [
            pl.BlockSpec((block_b, block_v), lambda i, j: (i, j)),   # logits (bf16)
            pl.BlockSpec((8, 128), lambda i, j: (i, 0)),             # per-tile NLL sum
        ]
        out_shape = (
            jax.ShapeDtypeStruct((b_p, v_p), bf16),
            jax.ShapeDtypeStruct((nb * 8, 128), f32),
        )
        scratch_shapes = [
            pltpu.VMEM((block_b, e_p), f32),   # hidden state u (post-block)
            pltpu.VMEM((block_b, 1), f32),     # running max m
            pltpu.VMEM((block_b, 1), f32),     # running sum l
            pltpu.VMEM((block_b, 1), f32),     # target logit
        ]

        logits_p, nll_parts = pl.pallas_call(
            kernel,
            grid=grid,
            in_specs=in_specs,
            out_specs=out_specs,
            out_shape=out_shape,
            scratch_shapes=scratch_shapes,
            compiler_params=pltpu.CompilerParams(
                dimension_semantics=("parallel", "arbitrary"),
                vmem_limit_bytes=vmem_budget,
            ),
        )(xp, zp, tp, w1, b1, w2, b2, wpex, wpez, bpe, lng, lnb,
          wfc, bfc, wpr, bpr, whead)

        # In production choose B == b_p and a 128-multiple vocab so this slice
        # is a no-op; for the demo shapes it is a small copy.
        logits = logits_p[:b, :n_vocab]
        count = jnp.sum((targets != -1).astype(f32))
        # One partial sum per batch tile (every element of its 8x128 block).
        loss = jnp.sum(nll_parts[0::8, 0]) / count   # NaN if no valid target (PyTorch)
        return logits, loss, loss

    return jax.jit(fwd)


# ----------------------------- param init ------------------------------------

def init_params(key, input_size_x, input_size_z, n_embd, output_size):
    """Matches _init_weights: Linear weights ~ N(0, 0.02), biases zero,
    LayerNorm weight=1, bias=0. Weights stored pre-transposed as (in, out)."""
    ks = jax.random.split(key, 6)
    std = 0.02

    def w(k, shape):
        return (std * jax.random.normal(k, shape)).astype(jnp.float32)

    E = n_embd
    params = {
        "w1": w(ks[0], (input_size_x, E)),
        "b1": jnp.zeros((1, E), jnp.float32),
        "w2": w(ks[1], (input_size_z, E)),
        "b2": jnp.zeros((1, E), jnp.float32),
        "bpe": jnp.zeros((1, E), jnp.float32),
        "ln_g": jnp.ones((1, E), jnp.float32),
        "ln_b": jnp.zeros((1, E), jnp.float32),
        "wfc": w(ks[3], (E, 4 * E)),
        "bfc": jnp.zeros((1, 4 * E), jnp.float32),
        "wpr": w(ks[4], (4 * E, E)),
        "bpr": jnp.zeros((1, E), jnp.float32),
        "whead": w(ks[5], (E, output_size)),
    }
    wpe_full = w(ks[2], (2 * E, E))        # (in, out) form of the (E, 2E) weight
    params["wpe_x"] = wpe_full[:E, :]
    params["wpe_z"] = wpe_full[E:, :]
    return params


# ----------------------------- reference (plain JAX, same bf16 precision) -----

def reference_forward(x, z, targets, p):
    bf16, f32 = jnp.bfloat16, jnp.float32

    def mm(a, w):
        return jnp.dot(a.astype(bf16), w.astype(bf16), preferred_element_type=f32)

    h1 = mm(x, p["w1"]) + p["b1"]
    h2 = mm(z, p["w2"]) + p["b2"]
    u = mm(h1, p["wpe_x"]) + mm(h2, p["wpe_z"]) + p["bpe"]
    mu = jnp.mean(u, -1, keepdims=True)
    var = jnp.mean((u - mu) ** 2, -1, keepdims=True)
    ln = (u - mu) * lax.rsqrt(var + 1e-5) * p["ln_g"] + p["ln_b"]
    h = mm(ln, p["wfc"]) + p["bfc"]
    h = _gelu_exact(h)
    h = mm(h, p["wpr"]) + p["bpr"]
    u = u + h
    logits = mm(u, p["whead"])
    lse = jax.scipy.special.logsumexp(logits, axis=-1)
    valid = targets != -1
    safe_t = jnp.where(valid, targets, 0)
    tgt = jnp.take_along_axis(logits, safe_t[:, None], axis=-1)[:, 0]
    nll = lse - tgt
    loss = jnp.sum(jnp.where(valid, nll, 0.0)) / jnp.sum(valid)
    return logits, loss


# ----------------------------- main -------------------------------------------

if __name__ == "__main__":
    # Small config consistent with the module's forward.  block_b=16 /
    # block_v=128 are purely a functional smoke test; use block_b>=256 and
    # block_v 512-1024 in production.
    B, Dx, Dz, E, V = 40, 16, 24, 32, 10

    key = jax.random.PRNGKey(0)
    kx, kz, kt, kp = jax.random.split(key, 4)

    x = jax.random.normal(kx, (B, Dx), dtype=jnp.float32)
    z = jax.random.normal(kz, (B, Dz), dtype=jnp.float32)
    targets = jax.random.randint(kt, (B,), 0, V, dtype=jnp.int32)
    targets = targets.at[3].set(-1).at[17].set(-1)   # exercise ignore_index=-1

    params = init_params(kp, Dx, Dz, E, V)

    fwd = make_fullmodel_fn(params, block_b=16, block_v=128)
    logits, loss, loss2 = fwd(x, z, targets)
    jax.block_until_ready((logits, loss))

    ref_logits, ref_loss = reference_forward(x, z, targets, params)
    assert logits.shape == (B, V)
    # Kernel stores bf16 logits; compare against the bf16-rounded reference.
    ref_bf16 = ref_logits.astype(jnp.bfloat16).astype(jnp.float32)
    assert jnp.allclose(logits.astype(jnp.float32), ref_bf16,
                        atol=1e-5, rtol=2e-2), "logits mismatch"
    assert jnp.allclose(loss, ref_loss, atol=1e-4, rtol=1e-4), "loss mismatch"

    print("KERNEL_OK")
</pallas_src>

<mosaic_0001>
module attributes {stable_mosaic.version = 11 : i64} {
  func.func @fullmodel_kernel(%arg0: i32, %arg1: i32, %arg2: memref<16x128xbf16, #tpu.memory_space<vmem>>, %arg3: memref<16x128xbf16, #tpu.memory_space<vmem>>, %arg4: memref<16x1xi32, #tpu.memory_space<vmem>>, %arg5: memref<128x128xbf16, #tpu.memory_space<vmem>>, %arg6: memref<1x128xf32, #tpu.memory_space<vmem>>, %arg7: memref<128x128xbf16, #tpu.memory_space<vmem>>, %arg8: memref<1x128xf32, #tpu.memory_space<vmem>>, %arg9: memref<128x128xbf16, #tpu.memory_space<vmem>>, %arg10: memref<128x128xbf16, #tpu.memory_space<vmem>>, %arg11: memref<1x128xf32, #tpu.memory_space<vmem>>, %arg12: memref<1x128xf32, #tpu.memory_space<vmem>>, %arg13: memref<1x128xf32, #tpu.memory_space<vmem>>, %arg14: memref<128x128xbf16, #tpu.memory_space<vmem>>, %arg15: memref<1x128xf32, #tpu.memory_space<vmem>>, %arg16: memref<128x128xbf16, #tpu.memory_space<vmem>>, %arg17: memref<1x128xf32, #tpu.memory_space<vmem>>, %arg18: memref<128x128xbf16, #tpu.memory_space<vmem>>, %arg19: memref<16x128xbf16, #tpu.memory_space<vmem>>, %arg20: memref<8x128xf32, #tpu.memory_space<vmem>>, %arg21: memref<16x128xf32, #tpu.memory_space<vmem>>, %arg22: memref<16x1xf32, #tpu.memory_space<vmem>>, %arg23: memref<16x1xf32, #tpu.memory_space<vmem>>, %arg24: memref<16x1xf32, #tpu.memory_space<vmem>>) attributes {dimension_semantics = [#tpu.dimension_semantics<parallel>, #tpu.dimension_semantics<arbitrary>], iteration_bounds = array<i64: 4, 1>, scalar_prefetch = 0 : i64, scratch_operands = 4 : i64, tpu.core_type = #tpu.core_type<tc>, window_params = [{transform_indices = @transform_0, window_bounds = array<i64: 16, 128>}, {transform_indices = @transform_1, window_bounds = array<i64: 16, 128>}, {transform_indices = @transform_2, window_bounds = array<i64: 16, 1>}, {pipeline_mode = #tpu.pipeline_mode<synchronous>, transform_indices = @transform_3, window_bounds = array<i64: 128, 128>}, {pipeline_mode = #tpu.pipeline_mode<synchronous>, transform_indices = @transform_4, window_bounds = array<i64: 1, 128>}, {pipeline_mode = #tpu.pipeline_mode<synchronous>, transform_indices = @transform_5, window_bounds = array<i64: 128, 128>}, {pipeline_mode = #tpu.pipeline_mode<synchronous>, transform_indices = @transform_6, window_bounds = array<i64: 1, 128>}, {pipeline_mode = #tpu.pipeline_mode<synchronous>, transform_indices = @transform_7, window_bounds = array<i64: 128, 128>}, {pipeline_mode = #tpu.pipeline_mode<synchronous>, transform_indices = @transform_8, window_bounds = array<i64: 128, 128>}, {pipeline_mode = #tpu.pipeline_mode<synchronous>, transform_indices = @transform_9, window_bounds = array<i64: 1, 128>}, {pipeline_mode = #tpu.pipeline_mode<synchronous>, transform_indices = @transform_10, window_bounds = array<i64: 1, 128>}, {pipeline_mode = #tpu.pipeline_mode<synchronous>, transform_indices = @transform_11, window_bounds = array<i64: 1, 128>}, {pipeline_mode = #tpu.pipeline_mode<synchronous>, transform_indices = @transform_12, window_bounds = array<i64: 128, 128>}, {pipeline_mode = #tpu.pipeline_mode<synchronous>, transform_indices = @transform_13, window_bounds = array<i64: 1, 128>}, {pipeline_mode = #tpu.pipeline_mode<synchronous>, transform_indices = @transform_14, window_bounds = array<i64: 128, 128>}, {pipeline_mode = #tpu.pipeline_mode<synchronous>, transform_indices = @transform_15, window_bounds = array<i64: 1, 128>}, {transform_indices = @transform_16, window_bounds = array<i64: 128, 128>}, {transform_indices = @transform_17, window_bounds = array<i64: 16, 128>}, {transform_indices = @transform_18, window_bounds = array<i64: 8, 128>}]} {
    %c0_i32 = arith.constant 0 : i32
    %0 = arith.cmpi eq, %arg1, %c0_i32 : i32
    %1 = arith.extui %0 : i1 to i32
    %c0_i32_0 = arith.constant 0 : i32
    %2 = arith.cmpi ne, %1, %c0_i32_0 : i32
    scf.if %2 {
      %c0_29 = arith.constant 0 : index
      %c0_30 = arith.constant 0 : index
      %47 = vector.load %arg2[%c0_29, %c0_30] : memref<16x128xbf16, #tpu.memory_space<vmem>>, vector<16x128xbf16>
      %c0_31 = arith.constant 0 : index
      %c0_32 = arith.constant 0 : index
      %48 = vector.load %arg3[%c0_31, %c0_32] : memref<16x128xbf16, #tpu.memory_space<vmem>>, vector<16x128xbf16>
      %c0_33 = arith.constant 0 : index
      %c0_34 = arith.constant 0 : index
      %49 = vector.load %arg5[%c0_33, %c0_34] : memref<128x128xbf16, #tpu.memory_space<vmem>>, vector<128x128xbf16>
      %cst_35 = arith.constant dense<0.000000e+00> : vector<16x128xf32>
      %50 = tpu.matmul %47, %49, %cst_35 {dimension_numbers = #tpu.dot_dimension_numbers<[1], [0], [0], [1], [0, 0, 1, 1], [], []>} : vector<16x128xbf16>, vector<128x128xbf16>, vector<16x128xf32> -> vector<16x128xf32>
      %c0_36 = arith.constant 0 : index
      %c0_37 = arith.constant 0 : index
      %51 = vector.load %arg6[%c0_36, %c0_37] : memref<1x128xf32, #tpu.memory_space<vmem>>, vector<1x128xf32>
      %52 = vector.broadcast %51 : vector<1x128xf32> to vector<16x128xf32>
      %53 = arith.addf %50, %52 : vector<16x128xf32>
      %c0_38 = arith.constant 0 : index
      %c0_39 = arith.constant 0 : index
      %54 = vector.load %arg7[%c0_38, %c0_39] : memref<128x128xbf16, #tpu.memory_space<vmem>>, vector<128x128xbf16>
      %cst_40 = arith.constant dense<0.000000e+00> : vector<16x128xf32>
      %55 = tpu.matmul %48, %54, %cst_40 {dimension_numbers = #tpu.dot_dimension_numbers<[1], [0], [0], [1], [0, 0, 1, 1], [], []>} : vector<16x128xbf16>, vector<128x128xbf16>, vector<16x128xf32> -> vector<16x128xf32>
      %c0_41 = arith.constant 0 : index
      %c0_42 = arith.constant 0 : index
      %56 = vector.load %arg8[%c0_41, %c0_42] : memref<1x128xf32, #tpu.memory_space<vmem>>, vector<1x128xf32>
      %57 = vector.broadcast %56 : vector<1x128xf32> to vector<16x128xf32>
      %58 = arith.addf %55, %57 : vector<16x128xf32>
      %59 = arith.truncf %53 : vector<16x128xf32> to vector<16x128xbf16>
      %c0_43 = arith.constant 0 : index
      %c0_44 = arith.constant 0 : index
      %60 = vector.load %arg9[%c0_43, %c0_44] : memref<128x128xbf16, #tpu.memory_space<vmem>>, vector<128x128xbf16>
      %cst_45 = arith.constant dense<0.000000e+00> : vector<16x128xf32>
      %61 = tpu.matmul %59, %60, %cst_45 {dimension_numbers = #tpu.dot_dimension_numbers<[1], [0], [0], [1], [0, 0, 1, 1], [], []>} : vector<16x128xbf16>, vector<128x128xbf16>, vector<16x128xf32> -> vector<16x128xf32>
      %62 = arith.truncf %58 : vector<16x128xf32> to vector<16x128xbf16>
      %c0_46 = arith.constant 0 : index
      %c0_47 = arith.constant 0 : index
      %63 = vector.load %arg10[%c0_46, %c0_47] : memref<128x128xbf16, #tpu.memory_space<vmem>>, vector<128x128xbf16>
      %cst_48 = arith.constant dense<0.000000e+00> : vector<16x128xf32>
      %64 = tpu.matmul %62, %63, %cst_48 {dimension_numbers = #tpu.dot_dimension_numbers<[1], [0], [0], [1], [0, 0, 1, 1], [], []>} : vector<16x128xbf16>, vector<128x128xbf16>, vector<16x128xf32> -> vector<16x128xf32>
      %65 = arith.addf %61, %64 : vector<16x128xf32>
      %c0_49 = arith.constant 0 : index
      %c0_50 = arith.constant 0 : index
      %66 = vector.load %arg11[%c0_49, %c0_50] : memref<1x128xf32, #tpu.memory_space<vmem>>, vector<1x128xf32>
      %67 = vector.broadcast %66 : vector<1x128xf32> to vector<16x128xf32>
      %68 = arith.addf %65, %67 : vector<16x128xf32>
      %69 = tpu.iota {dimensions = array<i32: 1>} : vector<1x128xi32>
      %c32_i32 = arith.constant 32 : i32
      %70 = vector.broadcast %c32_i32 : i32 to vector<1x128xi32>
      %71 = arith.cmpi slt, %69, %70 : vector<1x128xi32>
      %cst_51 = arith.constant dense<0.000000e+00> : vector<16xf32>
      %72 = vector.multi_reduction <add>, %68, %cst_51 [1] : vector<16x128xf32> to vector<16xf32>
      %73 = vector.shape_cast %72 : vector<16xf32> to vector<16x1xf32>
      %cst_52 = arith.constant 3.125000e-02 : f32
      %74 = vector.broadcast %cst_52 : f32 to vector<16x1xf32>
      %75 = arith.mulf %73, %74 : vector<16x1xf32>
      %76 = vector.broadcast %75 : vector<16x1xf32> to vector<16x128xf32>
      %77 = arith.subf %68, %76 : vector<16x128xf32>
      %cst_53 = arith.constant 0.000000e+00 : f32
      %78 = vector.shape_cast %71 : vector<1x128xi1> to vector<1x128xi1>
      %79 = vector.broadcast %78 : vector<1x128xi1> to vector<16x128xi1>
      %80 = vector.broadcast %cst_53 : f32 to vector<16x128xf32>
      %81 = arith.select %79, %77, %80 : vector<16x128xi1>, vector<16x128xf32>
      %82 = arith.mulf %81, %81 : vector<16x128xf32>
      %cst_54 = arith.constant dense<0.000000e+00> : vector<16xf32>
      %83 = vector.multi_reduction <add>, %82, %cst_54 [1] : vector<16x128xf32> to vector<16xf32>
      %84 = vector.shape_cast %83 : vector<16xf32> to vector<16x1xf32>
      %cst_55 = arith.constant 3.125000e-02 : f32
      %85 = vector.broadcast %cst_55 : f32 to vector<16x1xf32>
      %86 = arith.mulf %84, %85 : vector<16x1xf32>
      %cst_56 = arith.constant 9.99999974E-6 : f32
      %87 = vector.broadcast %cst_56 : f32 to vector<16x1xf32>
      %88 = arith.addf %86, %87 : vector<16x1xf32>
      %89 = math.rsqrt %88 : vector<16x1xf32>
      %90 = vector.broadcast %89 : vector<16x1xf32> to vector<16x128xf32>
      %91 = arith.mulf %81, %90 : vector<16x128xf32>
      %c0_57 = arith.constant 0 : index
      %c0_58 = arith.constant 0 : index
      %92 = vector.load %arg12[%c0_57, %c0_58] : memref<1x128xf32, #tpu.memory_space<vmem>>, vector<1x128xf32>
      %93 = vector.broadcast %92 : vector<1x128xf32> to vector<16x128xf32>
      %94 = arith.mulf %91, %93 : vector<16x128xf32>
      %c0_59 = arith.constant 0 : index
      %c0_60 = arith.constant 0 : index
      %95 = vector.load %arg13[%c0_59, %c0_60] : memref<1x128xf32, #tpu.memory_space<vmem>>, vector<1x128xf32>
      %96 = vector.broadcast %95 : vector<1x128xf32> to vector<16x128xf32>
      %97 = arith.addf %94, %96 : vector<16x128xf32>
      %98 = arith.truncf %97 : vector<16x128xf32> to vector<16x128xbf16>
      %c0_61 = arith.constant 0 : index
      %c0_62 = arith.constant 0 : index
      %99 = vector.load %arg14[%c0_61, %c0_62] : memref<128x128xbf16, #tpu.memory_space<vmem>>, vector<128x128xbf16>
      %cst_63 = arith.constant dense<0.000000e+00> : vector<16x128xf32>
      %100 = tpu.matmul %98, %99, %cst_63 {dimension_numbers = #tpu.dot_dimension_numbers<[1], [0], [0], [1], [0, 0, 1, 1], [], []>} : vector<16x128xbf16>, vector<128x128xbf16>, vector<16x128xf32> -> vector<16x128xf32>
      %c0_64 = arith.constant 0 : index
      %c0_65 = arith.constant 0 : index
      %101 = vector.load %arg15[%c0_64, %c0_65] : memref<1x128xf32, #tpu.memory_space<vmem>>, vector<1x128xf32>
      %102 = vector.broadcast %101 : vector<1x128xf32> to vector<16x128xf32>
      %103 = arith.addf %100, %102 : vector<16x128xf32>
      %cst_66 = arith.constant 5.000000e-01 : f32
      %104 = vector.broadcast %cst_66 : f32 to vector<16x128xf32>
      %105 = arith.mulf %104, %103 : vector<16x128xf32>
      %cst_67 = arith.constant 0.707106769 : f32
      %106 = vector.broadcast %cst_67 : f32 to vector<16x128xf32>
      %107 = arith.mulf %103, %106 : vector<16x128xf32>
      %108 = math.erf %107 : vector<16x128xf32>
      %cst_68 = arith.constant 1.000000e+00 : f32
      %109 = vector.broadcast %cst_68 : f32 to vector<16x128xf32>
      %110 = arith.addf %109, %108 : vector<16x128xf32>
      %111 = arith.mulf %105, %110 : vector<16x128xf32>
      %112 = arith.truncf %111 : vector<16x128xf32> to vector<16x128xbf16>
      %c0_69 = arith.constant 0 : index
      %c0_70 = arith.constant 0 : index
      %113 = vector.load %arg16[%c0_69, %c0_70] : memref<128x128xbf16, #tpu.memory_space<vmem>>, vector<128x128xbf16>
      %cst_71 = arith.constant dense<0.000000e+00> : vector<16x128xf32>
      %114 = tpu.matmul %112, %113, %cst_71 {dimension_numbers = #tpu.dot_dimension_numbers<[1], [0], [0], [1], [0, 0, 1, 1], [], []>} : vector<16x128xbf16>, vector<128x128xbf16>, vector<16x128xf32> -> vector<16x128xf32>
      %c0_72 = arith.constant 0 : index
      %c0_73 = arith.constant 0 : index
      %115 = vector.load %arg17[%c0_72, %c0_73] : memref<1x128xf32, #tpu.memory_space<vmem>>, vector<1x128xf32>
      %116 = vector.broadcast %115 : vector<1x128xf32> to vector<16x128xf32>
      %117 = arith.addf %114, %116 : vector<16x128xf32>
      %118 = arith.addf %68, %117 : vector<16x128xf32>
      %c0_74 = arith.constant 0 : index
      %c0_75 = arith.constant 0 : index
      %119 = vector.load %arg21[%c0_74, %c0_75] : memref<16x128xf32, #tpu.memory_space<vmem>>, vector<16x128xf32>
      tpu.vector_store %arg21[%c0_74, %c0_75], %118 {strides = array<i32>} : memref<16x128xf32, #tpu.memory_space<vmem>>, vector<16x128xf32>,
      %cst_76 = arith.constant 0xFF800000 : f32
      %120 = vector.broadcast %cst_76 : f32 to vector<16x1xf32>
      %c0_77 = arith.constant 0 : index
      %c0_78 = arith.constant 0 : index
      %121 = vector.load %arg22[%c0_77, %c0_78] : memref<16x1xf32, #tpu.memory_space<vmem>>, vector<16x1xf32>
      tpu.vector_store %arg22[%c0_77, %c0_78], %120 {strides = array<i32>} : memref<16x1xf32, #tpu.memory_space<vmem>>, vector<16x1xf32>,
      %cst_79 = arith.constant 0.000000e+00 : f32
      %122 = vector.broadcast %cst_79 : f32 to vector<16x1xf32>
      %c0_80 = arith.constant 0 : index
      %c0_81 = arith.constant 0 : index
      %123 = vector.load %arg23[%c0_80, %c0_81] : memref<16x1xf32, #tpu.memory_space<vmem>>, vector<16x1xf32>
      tpu.vector_store %arg23[%c0_80, %c0_81], %122 {strides = array<i32>} : memref<16x1xf32, #tpu.memory_space<vmem>>, vector<16x1xf32>,
      %cst_82 = arith.constant 0.000000e+00 : f32
      %124 = vector.broadcast %cst_82 : f32 to vector<16x1xf32>
      %c0_83 = arith.constant 0 : index
      %c0_84 = arith.constant 0 : index
      %125 = vector.load %arg24[%c0_83, %c0_84] : memref<16x1xf32, #tpu.memory_space<vmem>>, vector<16x1xf32>
      tpu.vector_store %arg24[%c0_83, %c0_84], %124 {strides = array<i32>} : memref<16x1xf32, #tpu.memory_space<vmem>>, vector<16x1xf32>,
    } else {
    }
    %c0 = arith.constant 0 : index
    %c0_1 = arith.constant 0 : index
    %3 = vector.load %arg21[%c0, %c0_1] : memref<16x128xf32, #tpu.memory_space<vmem>>, vector<16x128xf32>
    %4 = arith.truncf %3 : vector<16x128xf32> to vector<16x128xbf16>
    %c0_2 = arith.constant 0 : index
    %c0_3 = arith.constant 0 : index
    %5 = vector.load %arg18[%c0_2, %c0_3] : memref<128x128xbf16, #tpu.memory_space<vmem>>, vector<128x128xbf16>
    %cst = arith.constant dense<0.000000e+00> : vector<16x128xf32>
    %6 = tpu.matmul %4, %5, %cst {dimension_numbers = #tpu.dot_dimension_numbers<[1], [0], [0], [1], [0, 0, 1, 1], [], []>} : vector<16x128xbf16>, vector<128x128xbf16>, vector<16x128xf32> -> vector<16x128xf32>
    %7 = arith.truncf %6 : vector<16x128xf32> to vector<16x128xbf16>
    %c0_4 = arith.constant 0 : index
    %c0_5 = arith.constant 0 : index
    %8 = vector.load %arg19[%c0_4, %c0_5] : memref<16x128xbf16, #tpu.memory_space<vmem>>, vector<16x128xbf16>
    tpu.vector_store %arg19[%c0_4, %c0_5], %7 {strides = array<i32>} : memref<16x128xbf16, #tpu.memory_space<vmem>>, vector<16x128xbf16>,
    %c128_i32 = arith.constant 128 : i32
    %9 = arith.muli %arg1, %c128_i32 : i32
    %10 = tpu.iota {dimensions = array<i32: 1>} : vector<16x128xi32>
    %11 = vector.broadcast %9 : i32 to vector<16x128xi32>
    %12 = arith.addi %11, %10 : vector<16x128xi32>
    %c10_i32 = arith.constant 10 : i32
    %13 = vector.broadcast %c10_i32 : i32 to vector<16x128xi32>
    %14 = arith.cmpi slt, %12, %13 : vector<16x128xi32>
    %cst_6 = arith.constant -1.000000e+30 : f32
    %15 = vector.broadcast %cst_6 : f32 to vector<16x128xf32>
    %16 = arith.select %14, %6, %15 : vector<16x128xi1>, vector<16x128xf32>
    %cst_7 = arith.constant dense<0xFF800000> : vector<16xf32>
    %17 = vector.multi_reduction <maximumf>, %16, %cst_7 [1] : vector<16x128xf32> to vector<16xf32>
    %18 = vector.shape_cast %17 : vector<16xf32> to vector<16x1xf32>
    %c0_8 = arith.constant 0 : index
    %c0_9 = arith.constant 0 : index
    %19 = vector.load %arg22[%c0_8, %c0_9] : memref<16x1xf32, #tpu.memory_space<vmem>>, vector<16x1xf32>
    %20 = arith.maximumf %19, %18 : vector<16x1xf32>
    %c0_10 = arith.constant 0 : index
    %c0_11 = arith.constant 0 : index
    %21 = vector.load %arg23[%c0_10, %c0_11] : memref<16x1xf32, #tpu.memory_space<vmem>>, vector<16x1xf32>
    %c0_12 = arith.constant 0 : index
    %c0_13 = arith.constant 0 : index
    %22 = vector.load %arg22[%c0_12, %c0_13] : memref<16x1xf32, #tpu.memory_space<vmem>>, vector<16x1xf32>
    %23 = arith.subf %22, %20 : vector<16x1xf32>
    %24 = math.exp %23 : vector<16x1xf32>
    %25 = arith.mulf %21, %24 : vector<16x1xf32>
    %26 = vector.broadcast %20 : vector<16x1xf32> to vector<16x128xf32>
    %27 = arith.subf %16, %26 : vector<16x128xf32>
    %28 = math.exp %27 : vector<16x128xf32>
    %cst_14 = arith.constant dense<0.000000e+00> : vector<16xf32>
    %29 = vector.multi_reduction <add>, %28, %cst_14 [1] : vector<16x128xf32> to vector<16xf32>
    %30 = vector.shape_cast %29 : vector<16xf32> to vector<16x1xf32>
    %31 = arith.addf %25, %30 : vector<16x1xf32>
    %c0_15 = arith.constant 0 : index
    %c0_16 = arith.constant 0 : index
    %32 = vector.load %arg23[%c0_15, %c0_16] : memref<16x1xf32, #tpu.memory_space<vmem>>, vector<16x1xf32>
    tpu.vector_store %arg23[%c0_15, %c0_16], %31 {strides = array<i32>} : memref<16x1xf32, #tpu.memory_space<vmem>>, vector<16x1xf32>,
    %c0_17 = arith.constant 0 : index
    %c0_18 = arith.constant 0 : index
    %33 = vector.load %arg22[%c0_17, %c0_18] : memref<16x1xf32, #tpu.memory_space<vmem>>, vector<16x1xf32>
    tpu.vector_store %arg22[%c0_17, %c0_18], %20 {strides = array<i32>} : memref<16x1xf32, #tpu.memory_space<vmem>>, vector<16x1xf32>,
    %c0_19 = arith.constant 0 : index
    %c0_20 = arith.constant 0 : index
    %34 = vector.load %arg4[%c0_19, %c0_20] : memref<16x1xi32, #tpu.memory_space<vmem>>, vector<16x1xi32>
    %c0_21 = arith.constant 0 : index
    %c0_22 = arith.constant 0 : index
    %35 = vector.load %arg24[%c0_21, %c0_22] : memref<16x1xf32, #tpu.memory_space<vmem>>, vector<16x1xf32>
    %36 = vector.broadcast %34 : vector<16x1xi32> to vector<16x128xi32>
    %37 = arith.cmpi eq, %12, %36 : vector<16x128xi32>
    %cst_23 = arith.constant 0.000000e+00 : f32
    %38 = vector.broadcast %cst_23 : f32 to vector<16x128xf32>
    %39 = arith.select %37, %6, %38 : vector<16x128xi1>, vector<16x128xf32>
    %cst_24 = arith.constant dense<0.000000e+00> : vector<16xf32>
    %40 = vector.multi_reduction <add>, %39, %cst_24 [1] : vector<16x128xf32> to vector<16xf32>
    %41 = vector.shape_cast %40 : vector<16xf32> to vector<16x1xf32>
    %42 = arith.addf %35, %41 : vector<16x1xf32>
    %c0_25 = arith.constant 0 : index
    %c0_26 = arith.constant 0 : index
    %43 = vector.load %arg24[%c0_25, %c0_26] : memref<16x1xf32, #tpu.memory_space<vmem>>, vector<16x1xf32>
    tpu.vector_store %arg24[%c0_25, %c0_26], %42 {strides = array<i32>} : memref<16x1xf32, #tpu.memory_space<vmem>>, vector<16x1xf32>,
    %c0_i32_27 = arith.constant 0 : i32
    %44 = arith.cmpi eq, %arg1, %c0_i32_27 : i32
    %45 = arith.extui %44 : i1 to i32
    %c0_i32_28 = arith.constant 0 : i32
    %46 = arith.cmpi ne, %45, %c0_i32_28 : i32
    scf.if %46 {
      %c0_29 = arith.constant 0 : index
      %c0_30 = arith.constant 0 : index
      %47 = vector.load %arg22[%c0_29, %c0_30] : memref<16x1xf32, #tpu.memory_space<vmem>>, vector<16x1xf32>
      %c0_31 = arith.constant 0 : index
      %c0_32 = arith.constant 0 : index
      %48 = vector.load %arg23[%c0_31, %c0_32] : memref<16x1xf32, #tpu.memory_space<vmem>>, vector<16x1xf32>
      %49 = math.log %48 : vector<16x1xf32>
      %50 = arith.addf %47, %49 : vector<16x1xf32>
      %c0_33 = arith.constant 0 : index
      %c0_34 = arith.constant 0 : index
      %51 = vector.load %arg4[%c0_33, %c0_34] : memref<16x1xi32, #tpu.memory_space<vmem>>, vector<16x1xi32>
      %c-1_i32 = arith.constant -1 : i32
      %52 = vector.broadcast %c-1_i32 : i32 to vector<16x1xi32>
      %53 = arith.cmpi ne, %51, %52 : vector<16x1xi32>
      %54 = arith.extui %53 : vector<16x1xi1> to vector<16x1xi32>
      %55 = arith.sitofp %54 : vector<16x1xi32> to vector<16x1xf32>
      %c0_35 = arith.constant 0 : index
      %c0_36 = arith.constant 0 : index
      %56 = vector.load %arg24[%c0_35, %c0_36] : memref<16x1xf32, #tpu.memory_space<vmem>>, vector<16x1xf32>
      %57 = arith.subf %50, %56 : vector<16x1xf32>
      %58 = arith.mulf %57, %55 : vector<16x1xf32>
      %cst_37 = arith.constant dense<0.000000e+00> : vector<1xf32>
      %59 = vector.multi_reduction <add>, %58, %cst_37 [0] : vector<16x1xf32> to vector<1xf32>
      %60 = vector.shape_cast %59 : vector<1xf32> to vector<1x1xf32>
      %61 = vector.shape_cast %60 : vector<1x1xf32> to vector<1x1xf32>
      %62 = vector.broadcast %61 : vector<1x1xf32> to vector<8x128xf32>
      %c0_38 = arith.constant 0 : index
      %c0_39 = arith.constant 0 : index
      %63 = vector.load %arg20[%c0_38, %c0_39] : memref<8x128xf32, #tpu.memory_space<vmem>>, vector<8x128xf32>
      tpu.vector_store %arg20[%c0_38, %c0_39], %62 {strides = array<i32>} : memref<8x128xf32, #tpu.memory_space<vmem>>, vector<8x128xf32>,
    } else {
    }
    return
  }
  func.func @transform_0(%arg0: i32, %arg1: i32) -> (i32, i32) {
    %c0_i32 = arith.constant 0 : i32
    %c0_i32_0 = arith.constant 0 : i32
    return %arg0, %c0_i32 : i32, i32
  }
  func.func @transform_1(%arg0: i32, %arg1: i32) -> (i32, i32) {
    %c0_i32 = arith.constant 0 : i32
    %c0_i32_0 = arith.constant 0 : i32
    return %arg0, %c0_i32 : i32, i32
  }
  func.func @transform_2(%arg0: i32, %arg1: i32) -> (i32, i32) {
    %c0_i32 = arith.constant 0 : i32
    %c0_i32_0 = arith.constant 0 : i32
    return %arg0, %c0_i32 : i32, i32
  }
  func.func @transform_3(%arg0: i32, %arg1: i32) -> (i32, i32) {
    %c0_i32 = arith.constant 0 : i32
    %c0_i32_0 = arith.constant 0 : i32
    %c0_i32_1 = arith.constant 0 : i32
    return %c0_i32, %c0_i32_0 : i32, i32
  }
  func.func @transform_4(%arg0: i32, %arg1: i32) -> (i32, i32) {
    %c0_i32 = arith.constant 0 : i32
    %c0_i32_0 = arith.constant 0 : i32
    %c0_i32_1 = arith.constant 0 : i32
    return %c0_i32, %c0_i32_0 : i32, i32
  }
  func.func @transform_5(%arg0: i32, %arg1: i32) -> (i32, i32) {
    %c0_i32 = arith.constant 0 : i32
    %c0_i32_0 = arith.constant 0 : i32
    %c0_i32_1 = arith.constant 0 : i32
    return %c0_i32, %c0_i32_0 : i32, i32
  }
  func.func @transform_6(%arg0: i32, %arg1: i32) -> (i32, i32) {
    %c0_i32 = arith.constant 0 : i32
    %c0_i32_0 = arith.constant 0 : i32
    %c0_i32_1 = arith.constant 0 : i32
    return %c0_i32, %c0_i32_0 : i32, i32
  }
  func.func @transform_7(%arg0: i32, %arg1: i32) -> (i32, i32) {
    %c0_i32 = arith.constant 0 : i32
    %c0_i32_0 = arith.constant 0 : i32
    %c0_i32_1 = arith.constant 0 : i32
    return %c0_i32, %c0_i32_0 : i32, i32
  }
  func.func @transform_8(%arg0: i32, %arg1: i32) -> (i32, i32) {
    %c0_i32 = arith.constant 0 : i32
    %c0_i32_0 = arith.constant 0 : i32
    %c0_i32_1 = arith.constant 0 : i32
    return %c0_i32, %c0_i32_0 : i32, i32
  }
  func.func @transform_9(%arg0: i32, %arg1: i32) -> (i32, i32) {
    %c0_i32 = arith.constant 0 : i32
    %c0_i32_0 = arith.constant 0 : i32
    %c0_i32_1 = arith.constant 0 : i32
    return %c0_i32, %c0_i32_0 : i32, i32
  }
  func.func @transform_10(%arg0: i32, %arg1: i32) -> (i32, i32) {
    %c0_i32 = arith.constant 0 : i32
    %c0_i32_0 = arith.constant 0 : i32
    %c0_i32_1 = arith.constant 0 : i32
    return %c0_i32, %c0_i32_0 : i32, i32
  }
  func.func @transform_11(%arg0: i32, %arg1: i32) -> (i32, i32) {
    %c0_i32 = arith.constant 0 : i32
    %c0_i32_0 = arith.constant 0 : i32
    %c0_i32_1 = arith.constant 0 : i32
    return %c0_i32, %c0_i32_0 : i32, i32
  }
  func.func @transform_12(%arg0: i32, %arg1: i32) -> (i32, i32) {
    %c0_i32 = arith.constant 0 : i32
    %c0_i32_0 = arith.constant 0 : i32
    %c0_i32_1 = arith.constant 0 : i32
    return %c0_i32, %c0_i32_0 : i32, i32
  }
  func.func @transform_13(%arg0: i32, %arg1: i32) -> (i32, i32) {
    %c0_i32 = arith.constant 0 : i32
    %c0_i32_0 = arith.constant 0 : i32
    %c0_i32_1 = arith.constant 0 : i32
    return %c0_i32, %c0_i32_0 : i32, i32
  }
  func.func @transform_14(%arg0: i32, %arg1: i32) -> (i32, i32) {
    %c0_i32 = arith.constant 0 : i32
    %c0_i32_0 = arith.constant 0 : i32
    %c0_i32_1 = arith.constant 0 : i32
    return %c0_i32, %c0_i32_0 : i32, i32
  }
  func.func @transform_15(%arg0: i32, %arg1: i32) -> (i32, i32) {
    %c0_i32 = arith.constant 0 : i32
    %c0_i32_0 = arith.constant 0 : i32
    %c0_i32_1 = arith.constant 0 : i32
    return %c0_i32, %c0_i32_0 : i32, i32
  }
  func.func @transform_16(%arg0: i32, %arg1: i32) -> (i32, i32) {
    %c0_i32 = arith.constant 0 : i32
    %c0_i32_0 = arith.constant 0 : i32
    return %c0_i32, %arg1 : i32, i32
  }
  func.func @transform_17(%arg0: i32, %arg1: i32) -> (i32, i32) {
    %c0_i32 = arith.constant 0 : i32
    return %arg0, %arg1 : i32, i32
  }
  func.func @transform_18(%arg0: i32, %arg1: i32) -> (i32, i32) {
    %c0_i32 = arith.constant 0 : i32
    %c0_i32_0 = arith.constant 0 : i32
    return %arg0, %c0_i32 : i32, i32
  }
}

</mosaic_0001>

<bundles_post_ra>
// kernel: fwd.1
= control target key start
LH: loop header
LB: loop body
LE: loop exit
PB: predicated region body
PF: predicated region fallthrough
CT: control target
= control target key end

     0   :  { %s2761_s0 = inlined_call_operand.vmem [shape: bf16[64,128], index: 0, kind: input, shape index: {}]   ;;  %s2762_s1 = inlined_call_operand.vmem [shape: bf16[64,128], index: 1, kind: input, shape index: {}]   ;;  %s2763_s2 = inlined_call_operand.vmem [shape: s32[64,1], index: 2, kind: input, shape index: {}]   ;;  %s2764_s3 = inlined_call_operand.vmem [shape: bf16[128,128], index: 3, kind: input, shape index: {}]   ;;  %s2765_s4 = inlined_call_operand.vmem [shape: f32[1,128], index: 4, kind: input, shape index: {}, may-alias: {4,6,9,11,13,15}]   ;;  %s2766_s5 = inlined_call_operand.vmem [shape: bf16[128,128], index: 5, kind: input, shape index: {}]   ;;  %s2767_s6 = inlined_call_operand.vmem [shape: f32[1,128], index: 6, kind: input, shape index: {}, may-alias: {4,6,9,11,13,15}]   ;;  %s2768_s7 = inlined_call_operand.vmem [shape: bf16[128,128], index: 7, kind: input, shape index: {}]   ;;  %s2769_s8 = inlined_call_operand.vmem [shape: bf16[128,128], index: 8, kind: input, shape index: {}]   ;;  %s2770_s9 = inlined_call_operand.vmem [shape: f32[1,128], index: 9, kind: input, shape index: {}, may-alias: {4,6,9,11,13,15}]   ;;  %s2771_s10 = inlined_call_operand.vmem [shape: f32[1,128], index: 10, kind: input, shape index: {}]   ;;  %s2772_s11 = inlined_call_operand.vmem [shape: f32[1,128], index: 11, kind: input, shape index: {}, may-alias: {4,6,9,11,13,15}]   ;;  %s2773_s12 = inlined_call_operand.vmem [shape: bf16[128,128], index: 12, kind: input, shape index: {}]   ;;  %s2774_s13 = inlined_call_operand.vmem [shape: f32[1,128], index: 13, kind: input, shape index: {}, may-alias: {4,6,9,11,13,15}]   ;;  %s2775_s14 = inlined_call_operand.vmem [shape: bf16[128,128], index: 14, kind: input, shape index: {}]   ;;  %s2776_s15 = inlined_call_operand.vmem [shape: f32[1,128], index: 15, kind: input, shape index: {}, may-alias: {4,6,9,11,13,15}]   ;;  %s2777_s16 = inlined_call_operand.hbm [shape: bf16[128,128], index: 16, kind: input, shape index: {}]   ;;  %s2778_s17 = inlined_call_operand.vmem [shape: bf16[64,128], index: 17, kind: output, shape index: {0}]   ;;  %s2779_s18 = inlined_call_operand.vmem [shape: f32[32,128], index: 18, kind: output, shape index: {1}]  }
   0x1   :  { %2784 = sst [smem:[#allocation11_spill]] %s2761_s0 }
   0x2   :  { %2785 = sst [smem:[#allocation12_spill]] %s2762_s1 }
   0x3   :  { %2786 = sst [smem:[#allocation13_spill]] %s2763_s2 }
   0x4   :  { %2787 = sst [smem:[#allocation14_spill]] %s2777_s16 }
   0x5   :  { %24 = vsyncpa [#allocation7], 0  ;;  %s2391_s27 = smov 0   ;;  %s2393_s28 = smov 0  }
   0x6   :  { %s2395_s29 = smov 0  }
   0x7 LB: > { %2788 = sst [smem:[#allocation9_spill]] %s2283_s28  ;;  %s1815_s30 = sadd.s32 4294967295, %s2287_s29   ;;  %s2287_s29 = sphi %s2395_s29, %s30_s29   ;;  %s2283_s28 = sphi %s2393_s28, %s2800_s28   ;;  %s2279_s27 = sphi %s2391_s27, %s2799_s27  }
   0x8   : > { %s42_s0 = sadd.s32 1, %s2283_s28  ;;  %p1817_p1 = scmp.ge.s32.totalorder %s2287_s29, 1 }
   0x9   : > { %p44_p0 = scmp.ge.s32.totalorder %s42_s0, 4  ;;  %p478_p2 = scmp.lt.s32.totalorder %s2287_s29, 5 }
   0xa   : > { %p2416_p4 = scmp.eq.s32.totalorder %s1815_s30, 0  ;;  %s2289_s20 = smov [#allocation6]  }
   0xb   : > { %s2802_s0 = smov (%p44_p0, %s42_s0), 0  ;;  %p2412_p3 = pnand %p1817_p1, %p478_p2 }
   0xc   : > { %2789 = sst [smem:[#allocation10_spill]] %s2802_s0  ;;  %s531_s21 = sshll.u32 %s2289_s20, 4  ;;  %s532_s21 = int_to_ptr.vmem [resolvable:$true] %s531_s21 }
   0xd   : > { %s2790_s19 = scalar_select %p2412_p3, 1, 0 }
   0xe   : > { %s2791_s1 = scalar_select %p2416_p4, 1, 0 }
   0xf   : > { %p2116_p5 = pneg %p2412_p3  ;;  %s2793_s16 = sld [smem:[#allocation14_spill]] }
  0x11   : > { %p2424_p6 = pnand %p2416_p4, %p2116_p5 }
  0x13   : > { %p2235_p8 = pneg %p2424_p6 }
  0x15   : > { %s2233_s24 = scalar_lea.hbm %s2793_s16, 1024 }
  0x16   : > { %p2234_p7 = scmp.ne.s32.totalorder %s2793_s16, %s2233_s24  ;;  %p2240_p11 = scmp.lt.u32.totalorder %s2233_s24, %s2793_s16 }
  0x18   : > { %p2236_p9 = pnand %p2235_p8, %p2234_p7 }
  0x1a   : > { %p2237_p10 = pneg %p2236_p9 }
  0x1c   : > { %p2242_p12 = pnand %p2240_p11, %p2237_p10 }
  0x1e   : > { %2245 = shalt.err (!%p2242_p12)
}
  0x1f   : > { %s2246_s0 = scalar_lea.vmem %s532_s21, 1024  ;;  %p2254_p2 = scmp.lt.s32.totalorder %s532_s21, %s532_s21 }
  0x20   : > { %p2247_p13 = scmp.ne.s32.totalorder %s532_s21, %s2246_s0  ;;  %p2255_p5 = scmp.lt.s32.totalorder %s2246_s0, %s2246_s0 }
  0x22   : > { %p2249_p0 = pnand %p2247_p13, %p2235_p8  ;;  %p2256_p4 = por %p2255_p5, %p2254_p2 }
  0x24   : > { %p2250_p1 = pneg %p2249_p0 }
  0x26   : > { %p2257_p3 = pnand %p2256_p4, %p2250_p1 }
  0x28   : > { %2260 = shalt.err (!%p2257_p3)
}
  0x29   : > { %s2290_s2 = smov 64   ;;  %s2291_s23 = smov 4  }
  0x2a   : > { %2119 = dma.hbm_to_vmem [thread:$0]  (!%p2424_p6), %s2793_s16, 1024, %s532_s21, [#allocation7], %s2290_s2, %s2290_s2, %s2291_s23  }
  0x2b   : > { %p2794_p7 = scmp.ne.s32.totalorder %s2790_s19, 0 }
  0x2c   : > { %p2795_p9 = scmp.ne.s32.totalorder (!%p2794_p7), %s2791_s1, 0 }
  0x2d   : > { %574 = sbr.rel (%p2794_p7) target bundleno = 2111 (0x83f), region = 88 }
  0x34   : > { %2274 = dma.done.wait (%p2795_p9), [#allocation7], 1024  }
  0x35   : > { %2276 = vsyncadd (%p2795_p9), [#allocation7], 4294966272  ;;  %v2292_v0 = vmov 0.0   ;;  %vm2293_vm0 = vmmov 0   ;;  %v2155_v1 = vld [vmem:[%s2764_s3] sm:$0xff]   ;;  %s1822_s22 = sshll.u32 %s2279_s27, 1 }
  0x36   : > { %1972 = vmatprep.subr.bf16.mxu0 %v2292_v0  ;;  %1992 = vmatprep.subr.bf16.mxu1 %v2292_v0  ;;  %v2156_v2 = vld [vmem:[%s2766_s5] sm:$0xff]   ;;  %v2157_v3 = vld [vmem:[%s2764_s3 + $0x8] sm:$0xff]   ;;  %p646_p3 = scmp.lt.s32.totalorder %s1822_s22, 7  ;;  %v2159_v5 = vld [vmem:[%s2764_s3 + $0x10] sm:$0xff]   ;;  %s2796_s19 = sld [smem:[#allocation11_spill]]  ;;  %vm1429_vm2 = vcmask 7168  }
  0x37   : > { %1988 = vmatprep.mubr.msk.bf16.mxu0 %vm2293_vm0, %v2292_v0  ;;  %2008 = vmatprep.mubr.msk.bf16.mxu1 %vm2293_vm0, %v2292_v0  ;;  %v2158_v4 = vld [vmem:[%s2766_s5 + $0x8] sm:$0xff]   ;;  %v2160_v6 = vld [vmem:[%s2766_s5 + $0x10] sm:$0xff]   ;;  %v2161_v7 = vld [vmem:[%s2764_s3 + $0x18] sm:$0xff]   ;;  %s2797_s16 = sld [smem:[#allocation12_spill]]  ;;  %1432 = vst.msk [vmem:[#allocation4] sm:$0xff] %vm1429_vm2, %v2292_v0  ;;  %s2798_s2 = sld [smem:[#allocation13_spill]] }
  0x38   : > { %1973 = vmatpush3.bf16.msra.mxu0 %v2155_v1  ;;  %1993 = vmatpush3.bf16.msra.mxu1 %v2156_v2  ;;  %s2804_s22 = smov (!%p646_p3, %s1822_s22), 7  ;;  %v2162_v8 = vld [vmem:[%s2766_s5 + $0x18] sm:$0xff]   ;;  %v2163_v9 = vld [vmem:[%s2764_s3 + $0x20] sm:$0xff]   ;;  %v2165_v11 = vld [vmem:[%s2764_s3 + $0x28] sm:$0xff]   ;;  %v1142_v2 = vlaneseq  ;;  %1433 = vst.msk [vmem:[#allocation4 + $0x8] sm:$0xff] %vm1429_vm2, %v2292_v0  ;;  %p672_p4 = scmp.lt.s32.totalorder %s2279_s27, 3 }
  0x39   : > { %1974 = vmatprep.subr.bf16.mxu0 %v2292_v0  ;;  %1994 = vmatprep.subr.bf16.mxu1 %v2292_v0  ;;  %s2490_s30 = sshll.u32 %s2804_s22, 2  ;;  %v2164_v10 = vld [vmem:[%s2766_s5 + $0x20] sm:$0xff]   ;;  %v2166_v12 = vld [vmem:[%s2766_s5 + $0x28] sm:$0xff]   ;;  %v2167_v13 = vld [vmem:[%s2764_s3 + $0x30] sm:$0xff]   ;;  %1434 = vst.msk [vmem:[#allocation5] sm:$0xff] %vm1429_vm2, %v2292_v0  ;;  %s1827_s24 = sshll.u32 %s2804_s22, 3 }
  0x3a   : > { %v2168_v14 = vld [vmem:[%s2766_s5 + $0x30] sm:$0xff]   ;;  %v2169_v15 = vld [vmem:[%s2764_s3 + $0x38] sm:$0xff]   ;;  %v2173_v19 = vld [vmem:[%s2769_s8] sm:$0xff]   ;;  %1435 = vst.msk [vmem:[#allocation5 + $0x8] sm:$0xff] %vm1429_vm2, %v2292_v0  ;;  %s670_s1 = scalar_lea.vmem %s2778_s17, %s2490_s30  ;;  %s2806_s27 = smov (!%p672_p4, %s2279_s27), 3 }
  0x3b   : > { %v2170_v16 = vld [vmem:[%s2766_s5 + $0x38] sm:$0xff]   ;;  %v2174_v20 = vld [vmem:[%s2768_s7] sm:$0xff]   ;;  %v2175_v21 = vld [vmem:[%s2769_s8 + $0x8] sm:$0xff]   ;;  %s1830_s22 = sshll.u32 %s2806_s27, 3 }
  0x3c   : > { %1975 = vmatpush3.bf16.msra.mxu0 %v2157_v3  ;;  %1995 = vmatpush3.bf16.msra.mxu1 %v2158_v4  ;;  %s649_s21 = scalar_lea.vmem %s2796_s19, %s2490_s30  ;;  %v2176_v22 = vld [vmem:[%s2768_s7 + $0x8] sm:$0xff]   ;;  %v2177_v23 = vld [vmem:[%s2769_s8 + $0x10] sm:$0xff]   ;;  %v2179_v25 = vld [vmem:[%s2769_s8 + $0x18] sm:$0xff]   ;;  %v2625_v3 = vand.u32 127, %v1142_v2  ;;  %s675_s0 = scalar_lea.vmem %s2779_s18, %s1830_s22 }
  0x3d   : > { %1976 = vmatprep.subr.bf16.mxu0 %v2292_v0  ;;  %1996 = vmatprep.subr.bf16.mxu1 %v2292_v0  ;;  %s655_s28 = scalar_lea.vmem %s2797_s16, %s2490_s30  ;;  %v2171_v17 = vld [vmem:[%s649_s21] sm:$0xff]   ;;  %v2178_v24 = vld [vmem:[%s2768_s7 + $0x10] sm:$0xff]   ;;  %v2180_v26 = vld [vmem:[%s2768_s7 + $0x18] sm:$0xff]   ;;  %s661_s23 = scalar_lea.vmem %s2798_s2, %s1827_s24 }
  0x3e   : > { %v2172_v18 = vld [vmem:[%s655_s28] sm:$0xff]   ;;  %v2183_v29 = vld [vmem:[%s2769_s8 + $0x28] sm:$0xff]   ;;  %v2185_v31 = vld [vmem:[%s2769_s8 + $0x30] sm:$0xff]   ;;  %vm1144_vm1 = vcmp.lt.s32.totalorder %v2625_v3, 32  ;;  %vm1559_vm3 = vcmp.lt.s32.totalorder %v2625_v3, 10 }
  0x3f   : > { %v2181_v27 = vld [vmem:[%s2769_s8 + $0x20] sm:$0xff]   ;;  %v2184_v30 = vld [vmem:[%s2768_s7 + $0x28] sm:$0xff]   ;;  %v2186_v32 = vld [vmem:[%s2768_s7 + $0x30] sm:$0xff]  }
  0x40   : > { %1977 = vmatpush3.bf16.msra.mxu0 %v2159_v5  ;;  %1997 = vmatpush3.bf16.msra.mxu1 %v2160_v6  ;;  %v2182_v28 = vld [vmem:[%s2768_s7 + $0x20] sm:$0xff]   ;;  %v2187_v33 = vld [vmem:[%s2769_s8 + $0x38] sm:$0xff]  }
  0x41   : > { %1978 = vmatprep.subr.bf16.mxu0 %v2292_v0  ;;  %1998 = vmatprep.subr.bf16.mxu1 %v2292_v0  ;;  %v2188_v34 = vld [vmem:[%s2768_s7 + $0x38] sm:$0xff]   ;;  %v1831_v35 = vld [vmem:[%s2765_s4] ss:$0 sm:$0xff] }
  0x42   : > { %v1841_v37 = vld [vmem:[%s2767_s6] ss:$0 sm:$0xff] }
  0x43   : > { %v1867_v53 = vld [vmem:[%s2770_s9] ss:$0 sm:$0xff] }
  0x44   : > { %1979 = vmatpush3.bf16.msra.mxu0 %v2161_v7  ;;  %1999 = vmatpush3.bf16.msra.mxu1 %v2162_v8  ;;  %v2189_v1 = vld [vmem:[%s2773_s12] sm:$0xff]  }
  0x45   : > { %1980 = vmatprep.subr.bf16.mxu0 %v2292_v0  ;;  %2000 = vmatprep.subr.bf16.mxu1 %v2292_v0 }
  0x48   : > { %1981 = vmatpush3.bf16.msra.mxu0 %v2163_v9  ;;  %2001 = vmatpush3.bf16.msra.mxu1 %v2164_v10 }
  0x49   : > { %1982 = vmatprep.subr.bf16.mxu0 %v2292_v0  ;;  %2002 = vmatprep.subr.bf16.mxu1 %v2292_v0 }
  0x4c   : > { %1983 = vmatpush3.bf16.msra.mxu0 %v2165_v11  ;;  %2003 = vmatpush3.bf16.msra.mxu1 %v2166_v12 }
  0x4d   : > { %1984 = vmatprep.subr.bf16.mxu0 %v2292_v0  ;;  %2004 = vmatprep.subr.bf16.mxu1 %v2292_v0 }
  0x50   : > { %1985 = vmatpush3.bf16.msra.mxu0 %v2167_v13  ;;  %2005 = vmatpush3.bf16.msra.mxu1 %v2168_v14  ;;  %v2190_v14 = vld [vmem:[%s2773_s12 + $0x8] sm:$0xff]  }
  0x51   : > { %1986 = vmatprep.subr.bf16.mxu0 %v2292_v0  ;;  %2006 = vmatprep.subr.bf16.mxu1 %v2292_v0 }
  0x54   : > { %1987 = vmatpush3.bf16.msra.mxu0 %v2169_v15  ;;  %2007 = vmatpush3.bf16.msra.mxu1 %v2170_v16  ;;  %v2191_v15 = vld [vmem:[%s2773_s12 + $0x10] sm:$0xff]   ;;  %v2192_v16 = vld [vmem:[%s2773_s12 + $0x18] sm:$0xff]  }
  0x55   : > { %2012 = vmatprep.subr.bf16.mxu0 %v2292_v0  ;;  %2032 = vmatprep.subr.bf16.mxu1 %v2292_v0 }
  0x57   : > { %1989 = vmatmul.mubr.bf16.vlgmr.msra.gmra.mrb[0].mxu0 %v2171_v17  ;;  %2009 = vmatmul.mubr.bf16.vlgmr.msra.gmra.mrb[0].mxu1 %v2172_v18  ;;  %v2193_v17 = vld [vmem:[%s2773_s12 + $0x20] sm:$0xff]   ;;  %v2194_v18 = vld [vmem:[%s2773_s12 + $0x28] sm:$0xff]  }
  0x58   : > { %2013 = vmatpush3.bf16.msra.mxu0 %v2173_v19  ;;  %2033 = vmatpush3.bf16.msra.mxu1 %v2174_v20  ;;  %v2195_v19 = vld [vmem:[%s2773_s12 + $0x30] sm:$0xff]   ;;  %v2196_v20 = vld [vmem:[%s2773_s12 + $0x38] sm:$0xff]  }
  0x59   : > { %2014 = vmatprep.subr.bf16.mxu0 %v2292_v0  ;;  %2034 = vmatprep.subr.bf16.mxu1 %v2292_v0 }
  0x5a   : > { %2028 = vmatprep.mubr.msk.bf16.mxu0 %vm2293_vm0, %v2292_v0  ;;  %2048 = vmatprep.mubr.msk.bf16.mxu1 %vm2293_vm0, %v2292_v0 }
  0x5c   : > { %2015 = vmatpush3.bf16.msra.mxu0 %v2175_v21  ;;  %2035 = vmatpush3.bf16.msra.mxu1 %v2176_v22  ;;  %v2197_v21 = vld [vmem:[%s2775_s14] sm:$0xff]   ;;  %v2198_v22 = vld [vmem:[%s2775_s14 + $0x8] sm:$0xff]  }
  0x5d   : > { %2016 = vmatprep.subr.bf16.mxu0 %v2292_v0  ;;  %2036 = vmatprep.subr.bf16.mxu1 %v2292_v0 }
  0x60   : > { %2017 = vmatpush3.bf16.msra.mxu0 %v2177_v23  ;;  %2037 = vmatpush3.bf16.msra.mxu1 %v2178_v24 }
  0x61   : > { %2018 = vmatprep.subr.bf16.mxu0 %v2292_v0  ;;  %2038 = vmatprep.subr.bf16.mxu1 %v2292_v0 }
  0x64   : > { %2019 = vmatpush3.bf16.msra.mxu0 %v2179_v25  ;;  %2039 = vmatpush3.bf16.msra.mxu1 %v2180_v26 }
  0x65   : > { %2020 = vmatprep.subr.bf16.mxu0 %v2292_v0  ;;  %2040 = vmatprep.subr.bf16.mxu1 %v2292_v0 }
  0x68   : > { %2021 = vmatpush3.bf16.msra.mxu0 %v2181_v27  ;;  %2041 = vmatpush3.bf16.msra.mxu1 %v2182_v28 }
  0x69   : > { %2022 = vmatprep.subr.bf16.mxu0 %v2292_v0  ;;  %2042 = vmatprep.subr.bf16.mxu1 %v2292_v0 }
  0x6c   : > { %2023 = vmatpush3.bf16.msra.mxu0 %v2183_v29  ;;  %2043 = vmatpush3.bf16.msra.mxu1 %v2184_v30 }
  0x6d   : > { %2024 = vmatprep.subr.bf16.mxu0 %v2292_v0  ;;  %2044 = vmatprep.subr.bf16.mxu1 %v2292_v0 }
  0x70   : > { %2025 = vmatpush3.bf16.msra.mxu0 %v2185_v31  ;;  %2045 = vmatpush3.bf16.msra.mxu1 %v2186_v32  ;;  %v1868_v31 = vld [vmem:[%s2771_s10] ss:$0 sm:$0xff] }
  0x71   : > { %2026 = vmatprep.subr.bf16.mxu0 %v2292_v0  ;;  %2046 = vmatprep.subr.bf16.mxu1 %v2292_v0 }
  0x74   : > { %2027 = vmatpush3.bf16.msra.mxu0 %v2187_v33  ;;  %2047 = vmatpush3.bf16.msra.mxu1 %v2188_v34 }
  0x75   : > { %2052 = vmatprep.subr.bf16.mxu0 %v2292_v0  ;;  %2072 = vmatprep.subr.bf16.mxu1 %v2292_v0 }
 0x12a   : > { %v796_v36 = vpop.f32.mrb[0].mxu0  ;;  %v914_v38 = vpop.f32.mrb[0].mxu1 }
 0x12b   : > { %v1990_v39 = vpop.f32.mrb[1].mxu0  ;;  %v2010_v40 = vpop.f32.mrb[1].mxu1  ;;  %v797_v42 = vadd.f32 %v1831_v35, %v796_v36  ;;  %v915_v46 = vadd.f32 %v1841_v37, %v914_v38 }
 0x12c   : > { %v799_v41 = vpop.f32.mrb[2].mxu0  ;;  %v917_v44 = vpop.f32.mrb[2].mxu1  ;;  %v2199_v40 = vld [vmem:[%s2775_s14 + $0x10] sm:$0xff]  }
 0x12d   : > { %v800_v43 = vadd.f32 %v1831_v35, %v799_v41  ;;  %v1991_v45 = vpop.f32.mrb[3].mxu0  ;;  %v918_v47 = vadd.f32 %v1841_v37, %v917_v44  ;;  %v2011_v48 = vpop.f32.mrb[3].mxu1  ;;  %v1869_v35 = vld [vmem:[%s2772_s11] ss:$0 sm:$0xff]  ;;  %v2200_v41 = vld [vmem:[%s2775_s14 + $0x18] sm:$0xff]   ;;  %v2203_v44 = vld [vmem:[%s2775_s14 + $0x30] sm:$0xff]  }
 0x12e   : > { %v2204_v45 = vld [vmem:[%s2775_s14 + $0x38] sm:$0xff]   ;;  %v2207_v48 = vld [vmem:[#allocation6 + $0x10] sm:$0xff]  }
 0x12f   : > { %v921_v49 = vpack.c.bf16 %v800_v43, %v797_v42  ;;  %v938_v50 = vpack.c.bf16 %v918_v47, %v915_v46  ;;  %v2201_v42 = vld [vmem:[%s2775_s14 + $0x20] sm:$0xff]   ;;  %v2202_v43 = vld [vmem:[%s2775_s14 + $0x28] sm:$0xff]   ;;  %v2205_v46 = vld [vmem:[#allocation6] sm:$0xff]  }
 0x130   : > { %v2206_v47 = vld [vmem:[#allocation6 + $0x8] sm:$0xff]  }
 0x131   : > { %2049 = vmatmul.mubr.bf16.vlgmr.msra.gmra.mrb[4].mxu1 %v921_v49  ;;  %2029 = vmatmul.mubr.bf16.vlgmr.msra.gmra.mrb[4].mxu0 %v938_v50  ;;  %v2208_v49 = vld [vmem:[#allocation6 + $0x18] sm:$0xff]   ;;  %v2209_v50 = vld [vmem:[#allocation6 + $0x20] sm:$0xff]  }
 0x132   : > { %2088 = vmatprep.mubr.msk.bf16.mxu1 %vm2293_vm0, %v2292_v0  ;;  %2068 = vmatprep.mubr.msk.bf16.mxu0 %vm2293_vm0, %v2292_v0 }
 0x133   : > { %2053 = vmatpush3.bf16.msra.mxu0 %v2189_v1  ;;  %2073 = vmatpush3.bf16.msra.mxu1 %v2197_v21 }
 0x134   : > { %2054 = vmatprep.subr.bf16.mxu0 %v2292_v0  ;;  %2074 = vmatprep.subr.bf16.mxu1 %v2292_v0 }
 0x137   : > { %2055 = vmatpush3.bf16.msra.mxu0 %v2190_v14  ;;  %2075 = vmatpush3.bf16.msra.mxu1 %v2198_v22  ;;  %v2294_v22 = vmov -inf  }
 0x138   : > { %2056 = vmatprep.subr.bf16.mxu0 %v2292_v0  ;;  %2076 = vmatprep.subr.bf16.mxu1 %v2292_v0  ;;  %1430 = vst.msk [vmem:[#allocation3] sm:$0xff] %vm1429_vm2, %v2294_v22  ;;  %1431 = vst.msk [vmem:[#allocation3 + $0x8] sm:$0xff] %vm1429_vm2, %v2294_v22 }
 0x13b   : > { %2057 = vmatpush3.bf16.msra.mxu0 %v2191_v15  ;;  %2077 = vmatpush3.bf16.msra.mxu1 %v2199_v40 }
 0x13c   : > { %2058 = vmatprep.subr.bf16.mxu0 %v2292_v0  ;;  %2078 = vmatprep.subr.bf16.mxu1 %v2292_v0 }
 0x13f   : > { %2059 = vmatpush3.bf16.msra.mxu0 %v2192_v16  ;;  %2079 = vmatpush3.bf16.msra.mxu1 %v2200_v41 }
 0x140   : > { %2060 = vmatprep.subr.bf16.mxu0 %v2292_v0  ;;  %2080 = vmatprep.subr.bf16.mxu1 %v2292_v0 }
 0x143   : > { %2061 = vmatpush3.bf16.msra.mxu0 %v2193_v17  ;;  %2081 = vmatpush3.bf16.msra.mxu1 %v2201_v42 }
 0x144   : > { %2062 = vmatprep.subr.bf16.mxu0 %v2292_v0  ;;  %2082 = vmatprep.subr.bf16.mxu1 %v2292_v0 }
 0x147   : > { %2063 = vmatpush3.bf16.msra.mxu0 %v2194_v18  ;;  %2083 = vmatpush3.bf16.msra.mxu1 %v2202_v43 }
 0x148   : > { %2064 = vmatprep.subr.bf16.mxu0 %v2292_v0  ;;  %2084 = vmatprep.subr.bf16.mxu1 %v2292_v0 }
 0x14b   : > { %2065 = vmatpush3.bf16.msra.mxu0 %v2195_v19  ;;  %2085 = vmatpush3.bf16.msra.mxu1 %v2203_v44 }
 0x14c   : > { %2066 = vmatprep.subr.bf16.mxu0 %v2292_v0  ;;  %2086 = vmatprep.subr.bf16.mxu1 %v2292_v0 }
 0x14f   : > { %2067 = vmatpush3.bf16.msra.mxu0 %v2196_v20  ;;  %2087 = vmatpush3.bf16.msra.mxu1 %v2204_v45 }
 0x150   : > { %2092 = vmatprep.subr.bf16.mxu0 %v2292_v0 }
 0x204   : > { %v1126_v51 = vpop.f32.mrb[4].mxu1  ;;  %v1037_v52 = vpop.f32.mrb[4].mxu0 }
 0x205   : > { %v2050_v54 = vpop.f32.mrb[5].mxu1  ;;  %v1127_v55 = vadd.f32 %v1126_v51, %v1037_v52  ;;  %v2030_v56 = vpop.f32.mrb[5].mxu0  ;;  %v2210_v51 = vld [vmem:[#allocation6 + $0x28] sm:$0xff]   ;;  %v1870_v52 = vld [vmem:[%s2774_s13] ss:$0 sm:$0xff] }
 0x206   : > { %v1129_v57 = vpop.f32.mrb[6].mxu1  ;;  %v1040_v58 = vpop.f32.mrb[6].mxu0 }
 0x207   : > { %v2051_v59 = vpop.f32.mrb[7].mxu1  ;;  %v2615_v60 = vadd.f32 %v1867_v53, %v1127_v55  ;;  %v1130_v61 = vadd.f32 %v1129_v57, %v1040_v58  ;;  %v2031_v62 = vpop.f32.mrb[7].mxu0 }
 0x209   : > { %1145 = vadd.xlane.f32.xlu0 %v2615_v60  ;;  %v2618_v63 = vadd.f32 %v1867_v53, %v1130_v61 }
 0x20d   : > { %1147 = vadd.xlane.f32.xlu0 %v2618_v63 }
 0x296   : > { %v1146_v4 = vpop.xlane.xlu0 %1145 }
 0x297   : > { %v1149_v5 = vmul.f32 0.03125, %v1146_v4 }
 0x299   : > { %v1151_v6 = vsub.f32 %v2615_v60, %v1149_v5 }
 0x29a   : > { %v1148_v7 = vpop.xlane.xlu0 %1147 }
 0x29b   : > { %v1150_v8 = vmul.f32 0.03125, %v1148_v7  ;;  %v1155_v9 = vsel %vm1144_vm1, %v1151_v6, 0.0 }
 0x29c   : > { %v1157_v10 = vmul.f32 %v1155_v9, %v1155_v9 }
 0x29d   : > { %v1152_v11 = vsub.f32 %v2618_v63, %v1150_v8 }
 0x29e   : > { %1159 = vadd.xlane.f32.xlu1 %v1157_v10  ;;  %v2211_v10 = vld [vmem:[#allocation6 + $0x30] sm:$0xff]  }
 0x29f   : > { %v1156_v12 = vsel %vm1144_vm1, %v1152_v11, 0.0  ;;  %v2212_v11 = vld [vmem:[#allocation6 + $0x38] sm:$0xff]  }
 0x2a0   : > { %v1158_v13 = vmul.f32 %v1156_v12, %v1156_v12 }
 0x2a2   : > { %1161 = vadd.xlane.f32.xlu1 %v1158_v13 }
 0x32b   : > { %v1160_v23 = vpop.xlane.xlu1 %1159 }
 0x32c   : > { %v1163_v24 = vmul.f32 0.03125, %v1160_v23 }
 0x32e   : > { %v1165_v25 = vadd.f32 1e-05, %v1163_v24 }
 0x32f   : > { %v1162_v26 = vpop.xlane.xlu1 %1161 }
 0x330   : > { %2213 = vrsqrt.f32 %v1165_v25  ;;  %v1164_v27 = vmul.f32 0.03125, %v1162_v26 }
 0x332   : > { %v1166_v28 = vadd.f32 1e-05, %v1164_v27 }
 0x334   : > { %2215 = vrsqrt.f32 %v1166_v28  ;;  %v2295_v28 = vmov 0  }
 0x335   : > { %2153 = vset.pattern.permute.xlu0 %v2295_v28  ;;  %2154 = vset.pattern.permute.xlu1 %v2295_v28 }
 0x33a   : > { %v2214_v29 = vpop.eup %2213 }
 0x33b   : > { %v1169_v30 = vmul.f32 %v2214_v29, %v1155_v9  ;;  %v1566_v29 = vld [vmem:[#allocation3] sm:$0xff] }
 0x33d   : > { %v1178_v34 = vmul.f32 %v1868_v31, %v1169_v30 }
 0x33e   : > { %v2216_v32 = vpop.eup %2215 }
 0x33f   : > { %v1170_v33 = vmul.f32 %v2216_v32, %v1156_v12  ;;  %v1187_v37 = vadd.f32 %v1869_v35, %v1178_v34  ;;  %v1879_v12 = vld [vmem:[%s2776_s15] ss:$0 sm:$0xff] }
 0x341   : > { %v1179_v36 = vmul.f32 %v1868_v31, %v1170_v33  ;;  %v1567_v31 = vld [vmem:[#allocation3 + $0x8] sm:$0xff] }
 0x343   : > { %v1188_v38 = vadd.f32 %v1869_v35, %v1179_v36 }
 0x345   : > { %v1189_v39 = vpack.c.bf16 %v1188_v38, %v1187_v37  ;;  %v1607_v37 = vld [vmem:[%s661_s23] sm:$0xff]  ;;  %v2733_v38 = vld [vmem:[%s661_s23 + $0x8] sm:$0xff] }
 0x346   : > { %vm1644_vm6 = vcmp.ne.s32.totalorder %v1607_v37, 4294967295  ;;  %vm1645_vm7 = vcmp.ne.s32.totalorder %v2733_v38, 4294967295 }
 0x347   : > { %2069 = vmatmul.mubr.bf16.vlgmr.msra.gmra.mrb[8].mxu0 %v1189_v39 }
 0x348   : > { %2108 = vmatprep.mubr.msk.bf16.mxu0 %vm2293_vm0, %v2292_v0  ;;  %2093 = vmatpush3.bf16.msra.mxu0 %v2205_v46 }
 0x349   : > { %2094 = vmatprep.subr.bf16.mxu0 %v2292_v0 }
 0x34c   : > { %2095 = vmatpush3.bf16.msra.mxu0 %v2206_v47 }
 0x34d   : > { %2096 = vmatprep.subr.bf16.mxu0 %v2292_v0 }
 0x350   : > { %2097 = vmatpush3.bf16.msra.mxu0 %v2207_v48 }
 0x351   : > { %2098 = vmatprep.subr.bf16.mxu0 %v2292_v0 }
 0x354   : > { %2099 = vmatpush3.bf16.msra.mxu0 %v2208_v49 }
 0x355   : > { %2100 = vmatprep.subr.bf16.mxu0 %v2292_v0 }
 0x358   : > { %2101 = vmatpush3.bf16.msra.mxu0 %v2209_v50 }
 0x359   : > { %2102 = vmatprep.subr.bf16.mxu0 %v2292_v0 }
 0x35c   : > { %2103 = vmatpush3.bf16.msra.mxu0 %v2210_v51 }
 0x35d   : > { %2104 = vmatprep.subr.bf16.mxu0 %v2292_v0 }
 0x360   : > { %2105 = vmatpush3.bf16.msra.mxu0 %v2211_v10 }
 0x361   : > { %2106 = vmatprep.subr.bf16.mxu0 %v2292_v0 }
 0x364   : > { %2107 = vmatpush3.bf16.msra.mxu0 %v2212_v11 }
 0x41a   : > { %v1295_v53 = vpop.f32.mrb[8].mxu0 }
 0x41b   : > { %v1296_v54 = vadd.f32 %v1870_v52, %v1295_v53  ;;  %v2070_v55 = vpop.f32.mrb[9].mxu0 }
 0x41c   : > { %v1298_v56 = vpop.f32.mrb[10].mxu0 }
 0x41d   : > { %v1304_v57 = vmul.f32 0.70710677, %v1296_v54  ;;  %v1299_v58 = vadd.f32 %v1870_v52, %v1298_v56  ;;  %v2071_v59 = vpop.f32.mrb[11].mxu0  ;;  %v1302_v4 = vmul.f32 0.5, %v1296_v54  ;;  %v1570_v54 = vld [vmem:[#allocation4] sm:$0xff]  ;;  %v1571_v56 = vld [vmem:[#allocation4 + $0x8] sm:$0xff] }
 0x41f   : > { %2217 = verf.f32 %v1304_v57  ;;  %v1305_v61 = vmul.f32 0.70710677, %v1299_v58  ;;  %v1303_v5 = vmul.f32 0.5, %v1299_v58 }
 0x421   : > { %2219 = verf.f32 %v1305_v61 }
 0x429   : > { %v2218_v62 = vpop.eup %2217 }
 0x42a   : > { %v1308_v1 = vadd.f32 1.0, %v2218_v62 }
 0x42b   : > { %v2220_v2 = vpop.eup %2219 }
 0x42c   : > { %v1309_v6 = vadd.f32 1.0, %v2220_v2  ;;  %v1310_v7 = vmul.f32 %v1308_v1, %v1302_v4  ;;  %v1609_v1 = vld [vmem:[#allocation5] sm:$0xff] }
 0x42e   : > { %v1311_v8 = vmul.f32 %v1309_v6, %v1303_v5  ;;  %v1610_v5 = vld [vmem:[#allocation5 + $0x8] sm:$0xff] }
 0x430   : > { %v1312_v9 = vpack.c.bf16 %v1311_v8, %v1310_v7 }
 0x432   : > { %2089 = vmatmul.mubr.bf16.vlgmr.msra.gmra.mrb[8].mxu1 %v1312_v9 }
 0x505   : > { %v1418_v13 = vpop.f32.mrb[8].mxu1 }
 0x506   : > { %v1419_v14 = vadd.f32 %v1879_v12, %v1418_v13  ;;  %v2090_v15 = vpop.f32.mrb[9].mxu1 }
 0x507   : > { %v1421_v16 = vpop.f32.mrb[10].mxu1 }
 0x508   : > { %v1422_v17 = vadd.f32 %v1879_v12, %v1421_v16  ;;  %v2091_v18 = vpop.f32.mrb[11].mxu1  ;;  %v1425_v19 = vadd.f32 %v1419_v14, %v2615_v60  ;;  %v1898_v16 = vsel %vm1644_vm6, 1.0, %v2292_v0 }
 0x50a   : > { %v1426_v20 = vadd.f32 %v1422_v17, %v2618_v63 }
 0x50c   : > { %v1438_v21 = vpack.c.bf16 %v1426_v20, %v1425_v19 }
 0x50e   : > { %2109 = vmatmul.mubr.bf16.vlgmr.msra.gmra.mrb[12].mxu0 %v1438_v21  ;;  %v1899_v21 = vsel %vm1645_vm7, 1.0, %v2292_v0 }
 0x5e1   : > { %v1537_v60 = vpop.f32.mrb[12].mxu0 }
 0x5e2   : > { %v2110_v63 = vpop.f32.mrb[13].mxu0  ;;  %v1560_v23 = vsel %vm1559_vm3, %v1537_v60, -1e+30 }
 0x5e3   : > { %1562 = vmax.xlane.f32.xlu0 %v1560_v23  ;;  %v1540_v24 = vpop.f32.mrb[14].mxu0 }
 0x5e4   : > { %v1907_v25 = vpack.c.bf16 %v1540_v24, %v1537_v60  ;;  %v2111_v26 = vpop.f32.mrb[15].mxu0  ;;  %v1561_v27 = vsel %vm1559_vm3, %v1540_v24, -1e+30 }
 0x5e5   : > { %1564 = vmax.xlane.f32.xlu1 %v1561_v27 }
 0x5e6   : > { %1908 = vst [vmem:[%s670_s1] sm:$0xff] %v1907_v25  }
 0x670   : > { %v1563_v30 = vpop.xlane.xlu0 %1562 }
 0x671   : > { %v1568_v32 = vmax.f32 %v1566_v29, %v1563_v30 }
 0x672   : > { %v1565_v33 = vpop.xlane.xlu1 %1564 }
 0x673   : > { %v1572_v34 = vsub.f32 %v1566_v29, %v1568_v32  ;;  %1605 = vst.msk [vmem:[#allocation3] sm:$0xff] %vm1429_vm2, %v1568_v32  ;;  %v1569_v35 = vmax.f32 %v1567_v31, %v1565_v33  ;;  %1582 = vperm.xlu0 %2153, %v1568_v32  }
 0x675   : > { %v1573_v36 = vsub.f32 %v1567_v31, %v1569_v35  ;;  %1606 = vst.msk [vmem:[#allocation3 + $0x8] sm:$0xff] %vm1429_vm2, %v1569_v35  ;;  %1587 = vperm.xlu1 %2154, %v1569_v35   ;;  %v1574_v51 = vmul.f32 1.442695, %v1572_v34 }
 0x677   : > { %v1576_v52 = vmul.f32 1.442695, %v1573_v36 }
 0x679   : > { %1612 = vperm.xlu1 %2154, %v1607_v37  }
 0x67a   : > { %v1632_v13 = vld [vmem:[#allocation3] sm:$0xff] }
 0x67c   : > { %v1633_v17 = vld [vmem:[#allocation3 + $0x8] sm:$0xff] }
 0x67d   : > { %1615 = vperm.xlu1 %2154, %v2733_v38  }
 0x6f2   : > { %v1583_v39 = vpop.permute.xlu0 %1582 }
 0x6f3   : > { %v1590_v40 = vsub.f32 %v1560_v23, %v1583_v39 }
 0x6f4   : > { %v1588_v41 = vpop.permute.xlu1 %1587 }
 0x6f5   : > { %v1592_v42 = vmul.f32 1.442695, %v1590_v40  ;;  %v1591_v43 = vsub.f32 %v1561_v27, %v1588_v41 }
 0x6f7   : > { %2221 = vpow2.f32 %v1592_v42  ;;  %v1594_v44 = vmul.f32 1.442695, %v1591_v43 }
 0x6f8   : > { %v1613_v45 = vpop.permute.xlu1 %1612 }
 0x6f9   : > { %2223 = vpow2.f32 %v1594_v44  ;;  %vm1617_vm4 = vcmp.eq.s32.totalorder %v2625_v3, %v1613_v45 }
 0x6fa   : > { %v1619_v49 = vsel %vm1617_vm4, %v1537_v60, 0.0  ;;  %2225 = vpow2.f32 %v1574_v51 }
 0x6fb   : > { %2227 = vpow2.f32 %v1576_v52 }
 0x6fc   : > { %v1616_v48 = vpop.permute.xlu1 %1615 }
 0x6fd   : > { %vm1618_vm5 = vcmp.eq.s32.totalorder %v2625_v3, %v1616_v48 }
 0x6fe   : > { %v1620_v50 = vsel %vm1618_vm5, %v1540_v24, 0.0 }
 0x701   : > { %v2222_v46 = vpop.eup %2221 }
 0x702   : > { %1596 = vadd.xlane.f32.xlu1 %v2222_v46 }
 0x703   : > { %v2224_v47 = vpop.eup %2223 }
 0x704   : > { %1598 = vadd.xlane.f32.xlu0 %v2224_v47  ;;  %v2226_v53 = vpop.eup %2225 }
 0x705   : > { %v2228_v55 = vpop.eup %2227  ;;  %v1578_v57 = vmul.f32 %v2226_v53, %v1570_v54 }
 0x706   : > { %1621 = vadd.xlane.f32.xlu1 %v1619_v49  ;;  %v1579_v61 = vmul.f32 %v2228_v55, %v1571_v56 }
 0x70a   : > { %1623 = vadd.xlane.f32.xlu1 %v1620_v50 }
 0x78f   : > { %v1597_v58 = vpop.xlane.xlu1 %1596 }
 0x790   : > { %v1600_v59 = vadd.f32 %v1597_v58, %v1578_v57 }
 0x791   : > { %v1599_v62 = vpop.xlane.xlu0 %1598 }
 0x792   : > { %1603 = vst.msk [vmem:[#allocation4] sm:$0xff] %vm1429_vm2, %v1600_v59  ;;  %v1601_v3 = vadd.f32 %v1599_v62, %v1579_v61 }
 0x793   : > { %v1622_v2 = vpop.xlane.xlu1 %1621 }
 0x794   : > { %1604 = vst.msk [vmem:[#allocation4 + $0x8] sm:$0xff] %vm1429_vm2, %v1601_v3  ;;  %v1625_v4 = vadd.f32 %v1622_v2, %v1609_v1 }
 0x796   : > { %1627 = vst.msk [vmem:[#allocation5] sm:$0xff] %vm1429_vm2, %v1625_v4 }
 0x797   : > { %v1624_v6 = vpop.xlane.xlu1 %1623 }
 0x798   : > { %v1626_v7 = vadd.f32 %v1624_v6, %v1610_v5 }
 0x799   : > { %v1634_v8 = vld [vmem:[#allocation4] sm:$0xff] }
 0x79a   : > { %1628 = vst.msk [vmem:[#allocation5 + $0x8] sm:$0xff] %vm1429_vm2, %v1626_v7  ;;  %2229 = vlog2.f32 %v1634_v8 }
 0x79b   : > { %v1635_v9 = vld [vmem:[#allocation4 + $0x8] sm:$0xff] }
 0x79c   : > { %2231 = vlog2.f32 %v1635_v9 }
 0x79d   : > { %v1650_v18 = vld [vmem:[#allocation5] sm:$0xff] }
 0x7a1   : > { %v1651_v22 = vld [vmem:[#allocation5 + $0x8] sm:$0xff] }
 0x7a4   : > { %v2230_v10 = vpop.eup %2229 }
 0x7a5   : > { %v1637_v11 = vmul.f32 0.6931472, %v2230_v10 }
 0x7a6   : > { %v2232_v12 = vpop.eup %2231 }
 0x7a7   : > { %v1639_v14 = vmul.f32 0.6931472, %v2232_v12  ;;  %v1640_v15 = vadd.f32 %v1637_v11, %v1632_v13 }
 0x7a9   : > { %v1641_v19 = vadd.f32 %v1639_v14, %v1633_v17  ;;  %v1652_v20 = vsub.f32 %v1640_v15, %v1650_v18 }
 0x7ab   : > { %v1653_v60 = vsub.f32 %v1641_v19, %v1651_v22  ;;  %v1654_v63 = vmul.f32 %v1898_v16, %v1652_v20 }
 0x7ad   : > { %v1655_v23 = vmul.f32 %v1899_v21, %v1653_v60  ;;  %v1656_v24 = vsel %vm1429_vm2, %v1654_v63, 0.0 }
 0x7af   : > { %v1657_v25 = vsel %vm1429_vm2, %v1655_v23, 0.0 }
 0x7b0   : > { %v1658_v26 = vadd.f32 %v1657_v25, %v1656_v24 }
 0x7b2   : > { %v1659_v27 = vrot.slane %v1658_v26, 4 }
 0x7b4   : > { %v1660_v28 = vadd.f32 %v1659_v27, %v1658_v26 }
 0x7b6   : > { %v1661_v29 = vrot.slane %v1660_v28, 2 }
 0x7b8   : > { %v1662_v30 = vadd.f32 %v1661_v29, %v1660_v28 }
 0x7ba   : > { %v1663_v31 = vrot.slane %v1662_v30, 1 }
 0x7bc   : > { %v1664_v32 = vadd.f32 %v1663_v31, %v1662_v30 }
 0x7be   : > { %1667 = vperm.xlu1 %2154, %v1664_v32  }
 0x83d   : > { %v1668_v0 = vpop.permute.xlu1 %1667 }
 0x83e   : > { %1670 = vst [vmem:[%s675_s0] sm:$0xff] %v1668_v0 }
 0x83f PF: > { %s30_s29 = sadd.s32 1, %s2287_s29   ;;  %s2799_s27 = sld [smem:[#allocation9_spill]] }
 0x840   : > { %p27_p6 = scmp.ge.s32.totalorder %s30_s29, 6   ;;  %s2800_s28 = sld [smem:[#allocation10_spill]] }
 0x842   :  { %29 = sbr.rel (!%p27_p6) target bundleno = 7 (0x7), region = 150 }
 0x849   :  { %1713 = vsyncpa [#allocation7], 1 }
 0x84a   :  { %1715 = vsyncpa [#allocation7 + $0x1], 1 }

</bundles_post_ra>
